<compile_context>
chip_gen: v7x
topology: tpu7x:2x2x1
jax: 0.10.0
libtpu: 0.0.40
codegen_flags: <defaults>
</compile_context>

<pallas_src>
import functools

import jax
import jax.numpy as jnp
from jax import lax
from jax.experimental import pallas as pl
from jax.experimental.pallas import tpu as pltpu

_LANES = 128


def _round_up(x, m):
    return ((x + m - 1) // m) * m


# ---------------------------------------------------------------------------
# Kernel 1: Scale-Invariant Log loss (masked reduction), tiled + pipelined
# ---------------------------------------------------------------------------
def _silog_kernel(pred_ref, target_ref, mask_ref, out_ref, *, rows, need_tail):
    i = pl.program_id(1)

    @pl.when(i == 0)
    def _():
        out_ref[...] = jnp.zeros_like(out_ref)

    tr = pred_ref.shape[0]
    p = pred_ref[...].astype(jnp.float32)          # (TILE_R, 128)
    t = target_ref[...].astype(jnp.float32)
    m = mask_ref[...]
    if m.dtype == jnp.bool_:
        valid = m
    elif jnp.issubdtype(m.dtype, jnp.floating):
        valid = m.astype(jnp.float32) > 0.5        # match reference semantics for soft masks
    else:
        valid = m != 0

    if need_tail:
        # Rows past the end of the flattened input come from a partially out-of-bounds edge
        # block; exclude them here instead of padding the inputs host-side (extra HBM pass).
        row0 = (pl.program_id(0) * pl.num_programs(1) + i) * tr
        g_row = row0 + lax.broadcasted_iota(jnp.int32, (tr, _LANES), 0)
        valid = jnp.logical_and(valid, g_row < rows)

    mf = valid.astype(jnp.float32)
    p_safe = jnp.where(valid, p, 1.0)              # keep garbage / masked values out of log()
    t_safe = jnp.where(valid, t, 1.0)
    # single log instead of log(p) - log(t): halves EUP work (matters most on v5e)
    ld = jnp.log((p_safe + 1e-8) / (t_safe + 1e-8)) * mf

    def rowsum(x):                                 # (tr, 128) -> (8, 128), VPU adds only
        return x.reshape(tr // 8, 8, _LANES).sum(axis=0)

    out_ref[0, 0] += rowsum(mf)
    out_ref[0, 1] += rowsum(ld)
    out_ref[0, 2] += rowsum(ld * ld)


def silog_loss(pred_depth, target_depth, valid_mask, lambda_weight=0.85):
    lam = float(lambda_weight)
    n = pred_depth.size

    if n % _LANES == 0:
        rows = n // _LANES

        def prep(x):                               # free, contiguous reshape (no copy)
            return x.reshape(rows, _LANES)
    else:
        # Rare lane-unaligned case: one pad-to-lane copy.
        # TODO(synk): CompilerParams(allow_input_fusion=...) could fuse this pad away.
        rows = -(-n // _LANES)
        total = rows * _LANES

        def prep(x):
            return jnp.pad(x.reshape(-1), (0, total - n)).reshape(rows, _LANES)

    p2 = prep(pred_depth)                          # native dtypes; upcast in-kernel
    t2 = prep(target_depth)
    m2 = prep(valid_mask)                          # bool passes straight through (no astype)

    tile_r = min(2048, _round_up(rows, 32))        # multiple of 32 for 1-byte mask sub-tiles
    tiles_total = -(-rows // tile_r)
    # v7x has 2 TensorCores: split the reduction across them when tiles split evenly
    # (guarantees no fully out-of-bounds block); no effect on single-core v5e/v6e.
    ncores = 2 if tiles_total % 2 == 0 else 1
    tiles_per_core = tiles_total // ncores
    need_tail = (rows % tile_r != 0)

    bytes_in = (p2.size * p2.dtype.itemsize + t2.size * t2.dtype.itemsize
                + m2.size * m2.dtype.itemsize)

    parts = pl.pallas_call(
        functools.partial(_silog_kernel, rows=rows, need_tail=need_tail),
        out_shape=jax.ShapeDtypeStruct((ncores, 3, 8, _LANES), jnp.float32),
        grid=(ncores, tiles_per_core),
        in_specs=[pl.BlockSpec((tile_r, _LANES), lambda c, i: (c * tiles_per_core + i, 0)),
                  pl.BlockSpec((tile_r, _LANES), lambda c, i: (c * tiles_per_core + i, 0)),
                  pl.BlockSpec((tile_r, _LANES), lambda c, i: (c * tiles_per_core + i, 0))],
        out_specs=pl.BlockSpec((1, 3, 8, _LANES), lambda c, i: (c, 0, 0, 0)),
        compiler_params=pltpu.CompilerParams(
            dimension_semantics=("parallel", "arbitrary")),
        cost_estimate=pl.CostEstimate(flops=10 * n, transcendentals=n,
                                      bytes_accessed=bytes_in + ncores * 3 * 8 * _LANES * 4),
    )(p2, t2, m2)

    cnt = jnp.sum(parts[:, 0])
    s1 = jnp.sum(parts[:, 1])
    s2 = jnp.sum(parts[:, 2])
    safe_cnt = jnp.maximum(cnt, 1.0)
    mean = s1 / safe_cnt
    mean_sq = s2 / safe_cnt
    var = jnp.maximum(mean_sq - lam * mean * mean, 0.0)   # clamp fp noise before sqrt
    return jnp.where(cnt > 0.0, jnp.sqrt(var), jnp.float32(0.0))


# ---------------------------------------------------------------------------
# Kernel 2: edge-aware smoothness loss (per-sample mean factored out -> tiled)
# ---------------------------------------------------------------------------
def _pick_row_tile(h, wp, elem_bytes):
    # VMEM budget: (1 disp + 3 rgb) x 2 pipeline buffers of (th, wp) inputs plus ~12 (th, wp)
    # f32 temporaries / masks; keep comfortably under v7x's 32 MiB scoped-VMEM default.
    budget = 12 * 1024 * 1024
    per_row = wp * (4 * elem_bytes * 2 + 12 * 4)
    th = max(8, min(256, (budget // per_row) // 8 * 8))
    return int(min(th, _round_up(h, 8)))


def _smooth_kernel(disp_ref, img_ref, out_ref, pd_ref, pi_ref, xm_ref, ym_ref,
                   *, w, h, need_mask):
    t = pl.program_id(1)
    th = disp_ref.shape[1]
    wp = disp_ref.shape[2]
    f32 = jnp.float32

    d = disp_ref[0].astype(f32)                    # (th, wp)
    i0 = img_ref[0, 0].astype(f32)
    i1 = img_ref[0, 1].astype(f32)
    i2 = img_ref[0, 2].astype(f32)

    @pl.when(t == 0)
    def _():
        out_ref[...] = jnp.zeros_like(out_ref)     # out block is the resident accumulator

    if need_mask:
        # Lane-padded block (wp > W) and/or row tail (H % th != 0): zero garbage data and
        # build per-tile pair-validity masks.
        col = lax.broadcasted_iota(jnp.int32, (th, wp), 1)
        lrow = lax.broadcasted_iota(jnp.int32, (th, wp), 0)
        grow = lrow + t * th
        ok = jnp.logical_and(col < w, grow < h)
        d = jnp.where(ok, d, 0.0)
        i0 = jnp.where(ok, i0, 0.0)
        i1 = jnp.where(ok, i1, 0.0)
        i2 = jnp.where(ok, i2, 0.0)
        xmask = jnp.logical_and(col < (w - 1), grow < h).astype(f32)
        ymask = jnp.logical_and(jnp.logical_and(col < w, grow < (h - 1)),
                                lrow < (th - 1)).astype(f32)
    else:
        # Fully aligned: masks depend only on (th, wp); precompute once per sample.
        @pl.when(t == 0)
        def _():
            col = lax.broadcasted_iota(jnp.int32, (th, wp), 1)
            lrow = lax.broadcasted_iota(jnp.int32, (th, wp), 0)
            xm_ref[...] = (col < (w - 1)).astype(f32)
            ym_ref[...] = (lrow < (th - 1)).astype(f32)
        xmask = xm_ref[...]
        ymask = ym_ref[...]

    third = f32(1.0 / 3.0)

    # pltpu.roll(x, size-1, axis)[k] == x[(k+1) % size]: next neighbour along that axis.
    gdx = jnp.abs(d - pltpu.roll(d, wp - 1, 1))
    gix = (jnp.abs(i0 - pltpu.roll(i0, wp - 1, 1)) +
           jnp.abs(i1 - pltpu.roll(i1, wp - 1, 1)) +
           jnp.abs(i2 - pltpu.roll(i2, wp - 1, 1))) * third
    sx = gdx * jnp.exp(-gix) * xmask

    gdy = jnp.abs(d - pltpu.roll(d, th - 1, 0))
    giy = (jnp.abs(i0 - pltpu.roll(i0, th - 1, 0)) +
           jnp.abs(i1 - pltpu.roll(i1, th - 1, 0)) +
           jnp.abs(i2 - pltpu.roll(i2, th - 1, 0))) * third
    sy = gdy * jnp.exp(-giy) * ymask

    def accumulate(idx, x):                        # (th, wp) -> (8, wp), VPU adds only
        out_ref[0, idx] += x.reshape(th // 8, 8, wp).sum(axis=0)

    accumulate(0, d)    # raw disparity sum (per-sample mean factored out of the loss)
    accumulate(1, sx)
    accumulate(2, sy)

    # y-gradient across the tile boundary: previous tile's last row vs this tile's first row
    @pl.when(t > 0)
    def _():
        gdy_b = jnp.abs(pd_ref[...] - d[0:1, :])
        giy_b = (jnp.abs(pi_ref[0] - i0[0:1, :]) +
                 jnp.abs(pi_ref[1] - i1[0:1, :]) +
                 jnp.abs(pi_ref[2] - i2[0:1, :])) * third
        out_ref[0, 2, 0:1, :] += gdy_b * jnp.exp(-giy_b)

    # carry this tile's last row for the next tile of the same sample
    pd_ref[...] = d[th - 1:th, :]
    pi_ref[0] = i0[th - 1:th, :]
    pi_ref[1] = i1[th - 1:th, :]
    pi_ref[2] = i2[th - 1:th, :]


def smooth_loss(disp, img):
    # NOTE: pass disp/img as bf16 where available (kernel upcasts in-register); halves HBM
    # traffic on the mem-bound v5e/v6e generations.
    B, C, H, W = disp.shape                 # C == 1
    disp3 = disp.reshape(B, H, W)           # native dtype; upcast in-kernel

    wp = _round_up(W, _LANES)               # lane-dense block width (array itself stays W wide)
    th = _pick_row_tile(H, wp, disp.dtype.itemsize)
    nt = -(-H // th)
    need_mask = (wp != W) or (H % th != 0)

    bytes_in = disp3.size * disp3.dtype.itemsize + img.size * img.dtype.itemsize
    elems = B * H * W

    parts = pl.pallas_call(
        functools.partial(_smooth_kernel, w=W, h=H, need_mask=need_mask),
        out_shape=jax.ShapeDtypeStruct((B, 3, 8, wp), jnp.float32),
        grid=(B, nt),
        in_specs=[pl.BlockSpec((1, th, wp), lambda b, t: (b, t, 0)),
                  pl.BlockSpec((1, 3, th, wp), lambda b, t: (b, 0, t, 0))],
        out_specs=pl.BlockSpec((1, 3, 8, wp), lambda b, t: (b, 0, 0, 0)),
        scratch_shapes=[pltpu.VMEM((1, wp), jnp.float32),      # carried last disp row
                        pltpu.VMEM((3, 1, wp), jnp.float32),   # carried last rgb row
                        pltpu.VMEM((th, wp), jnp.float32),     # precomputed x pair mask
                        pltpu.VMEM((th, wp), jnp.float32)],    # precomputed y pair mask
        compiler_params=pltpu.CompilerParams(
            dimension_semantics=("parallel", "arbitrary"),     # batch across v7x's 2 cores
            vmem_limit_bytes=32 * 1024 * 1024),
        cost_estimate=pl.CostEstimate(flops=40 * elems, transcendentals=2 * elems,
                                      bytes_accessed=bytes_in + B * 3 * 8 * wp * 4),
    )(disp3, img)

    sums = jnp.sum(parts, axis=(2, 3))      # (B, 3): [sum_d, sum_x, sum_y] per sample
    # 1/(mean_d + eps) is per-sample and independent of the image weights, so apply it here.
    inv_mean = 1.0 / (sums[:, 0] / float(H * W) + 1e-7)
    loss_x = jnp.sum(sums[:, 1] * inv_mean) / float(B * H * (W - 1))
    loss_y = jnp.sum(sums[:, 2] * inv_mean) / float(B * (H - 1) * W)
    return loss_x + loss_y


# ---------------------------------------------------------------------------
# Module-level wrapper mirroring RTMonoDepthLoss.forward
# ---------------------------------------------------------------------------
def rt_monodepth_loss(predictions, targets,
                      si_weight=0.85, smooth_weight=0.001, scales=(0,)):
    total = silog_loss(predictions['depth'], targets['depth'], targets['valid_mask'],
                       lambda_weight=si_weight)

    if smooth_weight > 0 and 'disp' in predictions and 'rgb' in targets:
        sm = jnp.float32(0.0)
        for scale in scales:
            if scale > 0:
                # TODO(synk): bilinear F.interpolate resize for scales > 0 not implemented
                # (default scales=(0,) never hits this path).
                raise NotImplementedError("scale > 0 resize not implemented")
            sm = sm + smooth_loss(predictions['disp'][('disp', scale)],
                                  targets['rgb']) / (2.0 ** scale)
        total = total + smooth_weight * sm
    return total


# ---------------------------------------------------------------------------
# Pure-JAX references (sanity checks only)
# ---------------------------------------------------------------------------
def _silog_ref(pred, tgt, mask, lam=0.85):
    m = mask.astype(jnp.float32)
    ld = (jnp.log(jnp.where(mask, pred, 1.0) + 1e-8)
          - jnp.log(jnp.where(mask, tgt, 1.0) + 1e-8)) * m
    cnt = jnp.sum(m)
    mean = jnp.sum(ld) / cnt
    mean_sq = jnp.sum(ld * ld) / cnt
    return jnp.sqrt(mean_sq - lam * mean * mean)


def _smooth_ref(disp, img):
    nd = disp / (jnp.mean(disp, axis=(2, 3), keepdims=True) + 1e-7)
    gdx = jnp.abs(nd[:, :, :, :-1] - nd[:, :, :, 1:])
    gdy = jnp.abs(nd[:, :, :-1, :] - nd[:, :, 1:, :])
    gix = jnp.mean(jnp.abs(img[:, :, :, :-1] - img[:, :, :, 1:]), axis=1, keepdims=True)
    giy = jnp.mean(jnp.abs(img[:, :, :-1, :] - img[:, :, 1:, :]), axis=1, keepdims=True)
    return jnp.mean(gdx * jnp.exp(-gix)) + jnp.mean(gdy * jnp.exp(-giy))


if __name__ == "__main__":
    key = jax.random.PRNGKey(0)
    ks = jax.random.split(key, 10)

    def make_inputs(b, h, w):
        pred = jax.random.uniform(ks[0], (b, 1, h, w), jnp.float32, 0.1, 5.0)
        tgt = jax.random.uniform(ks[1], (b, 1, h, w), jnp.float32, 0.1, 5.0)
        msk = jax.random.uniform(ks[2], (b, 1, h, w), jnp.float32) > 0.3
        dsp = jax.random.uniform(ks[3], (b, 1, h, w), jnp.float32, 0.01, 1.0)
        rgb = jax.random.uniform(ks[4], (b, 3, h, w), jnp.float32)
        return pred, tgt, msk, dsp, rgb

    # 1) tiny lane-unaligned case (W=16): masked lane/row-tail paths
    pred, tgt, msk, dsp, rgb = make_inputs(2, 16, 16)
    preds = {'depth': pred, 'disp': {('disp', 0): dsp}}
    tgts = {'depth': tgt, 'valid_mask': msk, 'rgb': rgb}
    out = jax.block_until_ready(rt_monodepth_loss(preds, tgts))
    ref = _silog_ref(pred, tgt, msk) + 0.001 * _smooth_ref(dsp, rgb)
    assert jnp.allclose(out, ref, rtol=1e-4, atol=1e-5), ("case1", out, ref)

    # 2) lane-aligned case (W=128): precomputed-mask fast path + no SILog tail
    pred, tgt, msk, dsp, rgb = make_inputs(2, 16, 128)
    preds = {'depth': pred, 'disp': {('disp', 0): dsp}}
    tgts = {'depth': tgt, 'valid_mask': msk, 'rgb': rgb}
    out = jax.block_until_ready(rt_monodepth_loss(preds, tgts))
    ref = _silog_ref(pred, tgt, msk) + 0.001 * _smooth_ref(dsp, rgb)
    assert jnp.allclose(out, ref, rtol=1e-4, atol=1e-5), ("case2", out, ref)

    # 3) SILog only, large enough to trigger the 2-core split + multi-tile reduction
    pred = jax.random.uniform(ks[5], (2, 1, 400, 1024), jnp.float32, 0.1, 5.0)
    tgt = jax.random.uniform(ks[6], (2, 1, 400, 1024), jnp.float32, 0.1, 5.0)
    msk = jax.random.uniform(ks[7], (2, 1, 400, 1024), jnp.float32) > 0.3
    out = jax.block_until_ready(silog_loss(pred, tgt, msk))
    assert jnp.allclose(out, _silog_ref(pred, tgt, msk), rtol=1e-4, atol=1e-5), ("case3", out)

    # 4) smoothness only, multi row-tile (boundary carry) + row tail
    dsp = jax.random.uniform(ks[8], (1, 1, 320, 16), jnp.float32, 0.01, 1.0)
    rgb = jax.random.uniform(ks[9], (1, 3, 320, 16), jnp.float32)
    out = jax.block_until_ready(smooth_loss(dsp, rgb))
    assert jnp.allclose(out, _smooth_ref(dsp, rgb), rtol=1e-4, atol=1e-5), ("case4", out)

    print("KERNEL_OK")
</pallas_src>

<mosaic_0001>
module attributes {stable_mosaic.version = 11 : i64} {
  func.func @_silog_kernel(%arg0: i32, %arg1: i32, %arg2: memref<32x128xf32, #tpu.memory_space<vmem>>, %arg3: memref<32x128xf32, #tpu.memory_space<vmem>>, %arg4: memref<32x128xi32, #tpu.memory_space<vmem>>, %arg5: memref<1x3x8x128xf32, #tpu.memory_space<vmem>>) attributes {dimension_semantics = [#tpu.dimension_semantics<parallel>, #tpu.dimension_semantics<arbitrary>], iteration_bounds = array<i64: 1, 1>, scalar_prefetch = 0 : i64, scratch_operands = 0 : i64, tpu.core_type = #tpu.core_type<tc>, window_params = [{transform_indices = @transform_0, window_bounds = array<i64: 32, 128>}, {transform_indices = @transform_1, window_bounds = array<i64: 32, 128>}, {transform_indices = @transform_2, window_bounds = array<i64: 32, 128>}, {transform_indices = @transform_3, window_bounds = array<i64: 1, 3, 8, 128>}]} {
    %c0_i32 = arith.constant 0 : i32
    %0 = arith.cmpi eq, %arg1, %c0_i32 : i32
    %1 = arith.extui %0 : i1 to i32
    %c0_i32_0 = arith.constant 0 : i32
    %2 = arith.cmpi ne, %1, %c0_i32_0 : i32
    scf.if %2 {
      %cst_35 = arith.constant 0.000000e+00 : f32
      %54 = vector.broadcast %cst_35 : f32 to vector<1x3x8x128xf32>
      %c0_36 = arith.constant 0 : index
      %c0_37 = arith.constant 0 : index
      %c0_38 = arith.constant 0 : index
      %c0_39 = arith.constant 0 : index
      %55 = vector.load %arg5[%c0_36, %c0_37, %c0_38, %c0_39] : memref<1x3x8x128xf32, #tpu.memory_space<vmem>>, vector<1x3x8x128xf32>
      tpu.vector_store %arg5[%c0_36, %c0_37, %c0_38, %c0_39], %54 {strides = array<i32>} : memref<1x3x8x128xf32, #tpu.memory_space<vmem>>, vector<1x3x8x128xf32>,
    } else {
    }
    %c0 = arith.constant 0 : index
    %c0_1 = arith.constant 0 : index
    %3 = vector.load %arg2[%c0, %c0_1] : memref<32x128xf32, #tpu.memory_space<vmem>>, vector<32x128xf32>
    %c0_2 = arith.constant 0 : index
    %c0_3 = arith.constant 0 : index
    %4 = vector.load %arg3[%c0_2, %c0_3] : memref<32x128xf32, #tpu.memory_space<vmem>>, vector<32x128xf32>
    %c0_4 = arith.constant 0 : index
    %c0_5 = arith.constant 0 : index
    %5 = vector.load %arg4[%c0_4, %c0_5] : memref<32x128xi32, #tpu.memory_space<vmem>>, vector<32x128xi32>
    %cst = arith.constant dense<0> : vector<32x128xi32>
    %6 = arith.cmpi ne, %5, %cst : vector<32x128xi32>
    %c1_i32 = arith.constant 1 : i32
    %7 = arith.muli %arg0, %c1_i32 : i32
    %8 = arith.addi %7, %arg1 : i32
    %c32_i32 = arith.constant 32 : i32
    %9 = arith.muli %8, %c32_i32 : i32
    %10 = tpu.iota {dimensions = array<i32: 0>} : vector<32x128xi32>
    %11 = vector.broadcast %9 : i32 to vector<32x128xi32>
    %12 = arith.addi %11, %10 : vector<32x128xi32>
    %c4_i32 = arith.constant 4 : i32
    %13 = vector.broadcast %c4_i32 : i32 to vector<32x128xi32>
    %14 = arith.cmpi slt, %12, %13 : vector<32x128xi32>
    %15 = arith.andi %6, %14 : vector<32x128xi1>
    %16 = arith.extui %15 : vector<32x128xi1> to vector<32x128xi32>
    %17 = arith.sitofp %16 : vector<32x128xi32> to vector<32x128xf32>
    %cst_6 = arith.constant 1.000000e+00 : f32
    %18 = vector.broadcast %cst_6 : f32 to vector<32x128xf32>
    %19 = arith.select %15, %3, %18 : vector<32x128xi1>, vector<32x128xf32>
    %cst_7 = arith.constant 1.000000e+00 : f32
    %20 = vector.broadcast %cst_7 : f32 to vector<32x128xf32>
    %21 = arith.select %15, %4, %20 : vector<32x128xi1>, vector<32x128xf32>
    %cst_8 = arith.constant 9.99999993E-9 : f32
    %22 = vector.broadcast %cst_8 : f32 to vector<32x128xf32>
    %23 = arith.addf %19, %22 : vector<32x128xf32>
    %cst_9 = arith.constant 9.99999993E-9 : f32
    %24 = vector.broadcast %cst_9 : f32 to vector<32x128xf32>
    %25 = arith.addf %21, %24 : vector<32x128xf32>
    %26 = arith.divf %23, %25 : vector<32x128xf32>
    %27 = math.log %26 : vector<32x128xf32>
    %28 = arith.mulf %27, %17 : vector<32x128xf32>
    %c0_10 = arith.constant 0 : index
    %c0_11 = arith.constant 0 : index
    %c0_12 = arith.constant 0 : index
    %c0_13 = arith.constant 0 : index
    %29 = vector.load %arg5[%c0_10, %c0_11, %c0_12, %c0_13] : memref<1x3x8x128xf32, #tpu.memory_space<vmem>>, vector<1x1x8x128xf32>
    %30 = vector.shape_cast %29 : vector<1x1x8x128xf32> to vector<8x128xf32>
    %31 = vector.shape_cast %17 : vector<32x128xf32> to vector<4x8x128xf32>
    %cst_14 = arith.constant dense<0.000000e+00> : vector<8x128xf32>
    %32 = vector.multi_reduction <add>, %31, %cst_14 [0] : vector<4x8x128xf32> to vector<8x128xf32>
    %33 = arith.addf %30, %32 : vector<8x128xf32>
    %c0_15 = arith.constant 0 : index
    %c0_16 = arith.constant 0 : index
    %c0_17 = arith.constant 0 : index
    %c0_18 = arith.constant 0 : index
    %34 = vector.load %arg5[%c0_15, %c0_16, %c0_17, %c0_18] : memref<1x3x8x128xf32, #tpu.memory_space<vmem>>, vector<1x1x8x128xf32>
    %35 = vector.shape_cast %34 : vector<1x1x8x128xf32> to vector<8x128xf32>
    %36 = vector.shape_cast %33 : vector<8x128xf32> to vector<1x1x8x128xf32>
    tpu.vector_store %arg5[%c0_15, %c0_16, %c0_17, %c0_18], %36 {strides = array<i32>} : memref<1x3x8x128xf32, #tpu.memory_space<vmem>>, vector<1x1x8x128xf32>,
    %c0_19 = arith.constant 0 : index
    %c1 = arith.constant 1 : index
    %c0_20 = arith.constant 0 : index
    %c0_21 = arith.constant 0 : index
    %37 = vector.load %arg5[%c0_19, %c1, %c0_20, %c0_21] : memref<1x3x8x128xf32, #tpu.memory_space<vmem>>, vector<1x1x8x128xf32>
    %38 = vector.shape_cast %37 : vector<1x1x8x128xf32> to vector<8x128xf32>
    %39 = vector.shape_cast %28 : vector<32x128xf32> to vector<4x8x128xf32>
    %cst_22 = arith.constant dense<0.000000e+00> : vector<8x128xf32>
    %40 = vector.multi_reduction <add>, %39, %cst_22 [0] : vector<4x8x128xf32> to vector<8x128xf32>
    %41 = arith.addf %38, %40 : vector<8x128xf32>
    %c0_23 = arith.constant 0 : index
    %c1_24 = arith.constant 1 : index
    %c0_25 = arith.constant 0 : index
    %c0_26 = arith.constant 0 : index
    %42 = vector.load %arg5[%c0_23, %c1_24, %c0_25, %c0_26] : memref<1x3x8x128xf32, #tpu.memory_space<vmem>>, vector<1x1x8x128xf32>
    %43 = vector.shape_cast %42 : vector<1x1x8x128xf32> to vector<8x128xf32>
    %44 = vector.shape_cast %41 : vector<8x128xf32> to vector<1x1x8x128xf32>
    tpu.vector_store %arg5[%c0_23, %c1_24, %c0_25, %c0_26], %44 {strides = array<i32>} : memref<1x3x8x128xf32, #tpu.memory_space<vmem>>, vector<1x1x8x128xf32>,
    %c0_27 = arith.constant 0 : index
    %c2 = arith.constant 2 : index
    %c0_28 = arith.constant 0 : index
    %c0_29 = arith.constant 0 : index
    %45 = vector.load %arg5[%c0_27, %c2, %c0_28, %c0_29] : memref<1x3x8x128xf32, #tpu.memory_space<vmem>>, vector<1x1x8x128xf32>
    %46 = vector.shape_cast %45 : vector<1x1x8x128xf32> to vector<8x128xf32>
    %47 = arith.mulf %28, %28 : vector<32x128xf32>
    %48 = vector.shape_cast %47 : vector<32x128xf32> to vector<4x8x128xf32>
    %cst_30 = arith.constant dense<0.000000e+00> : vector<8x128xf32>
    %49 = vector.multi_reduction <add>, %48, %cst_30 [0] : vector<4x8x128xf32> to vector<8x128xf32>
    %50 = arith.addf %46, %49 : vector<8x128xf32>
    %c0_31 = arith.constant 0 : index
    %c2_32 = arith.constant 2 : index
    %c0_33 = arith.constant 0 : index
    %c0_34 = arith.constant 0 : index
    %51 = vector.load %arg5[%c0_31, %c2_32, %c0_33, %c0_34] : memref<1x3x8x128xf32, #tpu.memory_space<vmem>>, vector<1x1x8x128xf32>
    %52 = vector.shape_cast %51 : vector<1x1x8x128xf32> to vector<8x128xf32>
    %53 = vector.shape_cast %50 : vector<8x128xf32> to vector<1x1x8x128xf32>
    tpu.vector_store %arg5[%c0_31, %c2_32, %c0_33, %c0_34], %53 {strides = array<i32>} : memref<1x3x8x128xf32, #tpu.memory_space<vmem>>, vector<1x1x8x128xf32>,
    return
  }
  func.func @transform_0(%arg0: i32, %arg1: i32) -> (i32, i32) {
    %c1_i32 = arith.constant 1 : i32
    %0 = arith.muli %arg0, %c1_i32 : i32
    %1 = arith.addi %0, %arg1 : i32
    %c0_i32 = arith.constant 0 : i32
    %c0_i32_0 = arith.constant 0 : i32
    return %1, %c0_i32 : i32, i32
  }
  func.func @transform_1(%arg0: i32, %arg1: i32) -> (i32, i32) {
    %c1_i32 = arith.constant 1 : i32
    %0 = arith.muli %arg0, %c1_i32 : i32
    %1 = arith.addi %0, %arg1 : i32
    %c0_i32 = arith.constant 0 : i32
    %c0_i32_0 = arith.constant 0 : i32
    return %1, %c0_i32 : i32, i32
  }
  func.func @transform_2(%arg0: i32, %arg1: i32) -> (i32, i32) {
    %c1_i32 = arith.constant 1 : i32
    %0 = arith.muli %arg0, %c1_i32 : i32
    %1 = arith.addi %0, %arg1 : i32
    %c0_i32 = arith.constant 0 : i32
    %c0_i32_0 = arith.constant 0 : i32
    return %1, %c0_i32 : i32, i32
  }
  func.func @transform_3(%arg0: i32, %arg1: i32) -> (i32, i32, i32, i32) {
    %c0_i32 = arith.constant 0 : i32
    %c0_i32_0 = arith.constant 0 : i32
    %c0_i32_1 = arith.constant 0 : i32
    %c0_i32_2 = arith.constant 0 : i32
    return %arg0, %c0_i32, %c0_i32_0, %c0_i32_1 : i32, i32, i32, i32
  }
}

</mosaic_0001>

<bundles_post_ra>
// kernel: tpu_custom_call.1
= control target key start
LH: loop header
LB: loop body
LE: loop exit
PB: predicated region body
PF: predicated region fallthrough
CT: control target
= control target key end

     0   :  { %v136_v1 = vlaneseq  ;;  %s334_s0 = inlined_call_operand.vmem [shape: f32[4,128], index: 0, kind: input, shape index: {}]   ;;  %s335_s1 = inlined_call_operand.vmem [shape: f32[4,128], index: 1, kind: input, shape index: {}]   ;;  %s336_s2 = inlined_call_operand.vmem [shape: s32[4,128], index: 2, kind: input, shape index: {}]   ;;  %s337_s3 = inlined_call_operand.hbm [shape: f32[1,3,8,128], index: 3, kind: output, shape index: {}]  }
   0x1   :  { %v126_v0 = vld [vmem:[%s336_s2] sm:$0xff] }
   0x2   :  { %8 = vsyncpa [#allocation3], 0  ;;  %vm130_vm0 = vcmp.ne.s32.totalorder %v126_v0, 0  ;;  %v137_v2 = vshrl.u32 %v136_v1, 7  ;;  %v122_v3 = vld [vmem:[%s335_s1] sm:$0xff]  ;;  %v289_v4 = vmov 0.0  }
   0x3   :  { %v118_v8 = vld [vmem:[%s334_s0] sm:$0xff]  ;;  %s290_s1 = smov [#allocation2]  }
   0x4   :  { %vm146_vm1 = vcmp.lt.s32.totalorder %v137_v2, 4  ;;  %s227_s2 = sshll.u32 %s290_s1, 4  ;;  %s228_s2 = int_to_ptr.vmem [resolvable:$true] %s227_s2 }
   0x5   :  { %vm150_vm2 = vmand %vm130_vm0, %vm146_vm1  ;;  %s265_s18 = scalar_lea.vmem %s228_s2, 384  ;;  %p270_p1 = scmp.lt.s32.totalorder %s228_s2, %s228_s2 }
   0x6   :  { %v256_v5 = vsel %vm150_vm2, 1.0, %v289_v4  ;;  %v166_v6 = vsel %vm150_vm2, %v122_v3, 1.0  ;;  %v162_v9 = vsel %vm150_vm2, %v118_v8, 1.0  ;;  %p266_p0 = scmp.ne.s32.totalorder %s228_s2, %s265_s18  ;;  %p271_p2 = scmp.lt.s32.totalorder %s265_s18, %s265_s18 }
   0x7   :  { %v174_v7 = vadd.f32 1e-08, %v166_v6  ;;  %203 = vst [vmem:[#allocation2] sm:$0xff] %v256_v5  ;;  %v170_v10 = vadd.f32 1e-08, %v162_v9 }
   0x8   :  { %p272_p3 = por %p271_p2, %p270_p1 }
   0x9   :  { %261 = vrcp.f32 %v174_v7 }
   0xa   :  { %p273_p4 = pnand %p272_p3, %p266_p0 }
  0x13   :  { %v262_v11 = vpop.eup %261 }
  0x14   :  { %v179_v12 = vmul.f32 %v262_v11, %v170_v10 }
  0x16   :  { %263 = vlog2.f32 %v179_v12 }
  0x20   :  { %v264_v13 = vpop.eup %263 }
  0x21   :  { %v187_v14 = vmul.f32 0.6931472, %v264_v13 }
  0x23   :  { %v194_v15 = vmul.f32 %v256_v5, %v187_v14 }
  0x25   :  { %v213_v16 = vmul.f32 %v194_v15, %v194_v15  ;;  %210 = vst [vmem:[#allocation2 + $0x8] sm:$0xff] %v194_v15 }
  0x27   :  { %221 = vst [vmem:[#allocation2 + $0x10] sm:$0xff] %v213_v16 }
  0x28   :  { %276 = shalt.err (!%p273_p4)
}
  0x29   :  { %s277_s20 = scalar_lea.hbm %s337_s3, 384 }
  0x2a   :  { %p278_p5 = scmp.ne.s32.totalorder %s337_s3, %s277_s20  ;;  %p281_p6 = scmp.lt.u32.totalorder %s277_s20, %s337_s3 }
  0x2c   :  { %p283_p7 = pnand %p281_p6, %p278_p5 }
  0x2e   :  { %286 = shalt.err (!%p283_p7)
}
  0x2f   :  { %s291_s25 = smov 128   ;;  %s292_s26 = smov 8  }
  0x30   :  { %233 = dma.vmem_to_hbm [thread:$0]  %s228_s2, 384, %s337_s3, [#allocation3], %s291_s25, %s291_s25, %s292_s26  }
  0x31   :  { %287 = dma.done.wait [#allocation3], 384  }
  0x32   :  { %288 = vsyncadd [#allocation3], 4294966912 }
  0x33   :  { %237 = vsyncpa [#allocation3], 1 }

</bundles_post_ra>
